<compile_context>
chip_gen: v5e
topology: v5e:2x2
jax: 0.10.0
libtpu: 0.0.40
codegen_flags: <defaults>
</compile_context>

<pallas_src>
import functools

import jax
import jax.numpy as jnp
import numpy as np
from jax.experimental import pallas as pl
from jax.experimental.pallas import tpu as pltpu


def _mha_head_kernel(x_ref, wq_ref, bq_ref, wk_ref, bk_ref, wv_ref, bv_ref,
                     wo_ref, bo_ref, *rest, have_bias):
    """One (batch, head) pair per grid step."""
    if have_bias:
        bias_ref, out_ref, acc_ref = rest
    else:
        out_ref, acc_ref = rest
        bias_ref = None

    h = pl.program_id(1)
    nh = pl.num_programs(1)

    @pl.when(h == 0)
    def _():
        acc_ref[...] = jnp.zeros_like(acc_ref)

    x = x_ref[0]                     # [L, H]  bf16
    wq = wq_ref[0]                   # [H, d]  bf16 (scale folded in)
    wk = wk_ref[0]                   # [H, d]  bf16
    wv = wv_ref[0]                   # [H, d]  bf16

    # Per-head QKV projection (bf16 MXU, f32 accumulation).
    qh = jnp.dot(x, wq, preferred_element_type=jnp.float32) + bq_ref[0]   # [L, d]
    kh = jnp.dot(x, wk, preferred_element_type=jnp.float32) + bk_ref[0]   # [L, d]
    vh = jnp.dot(x, wv, preferred_element_type=jnp.float32) + bv_ref[0]   # [L, d]

    # logits = q @ k^T  (contract on head_dim; no materialized transpose).
    logits = jax.lax.dot_general(
        qh.astype(jnp.bfloat16), kh.astype(jnp.bfloat16),
        dimension_numbers=(((1,), (1,)), ((), ())),
        preferred_element_type=jnp.float32)                               # [L, L]

    if bias_ref is not None:
        logits = logits + bias_ref[0, 0]

    # Numerically stable softmax, normalization deferred past the PV matmul.
    m = jnp.max(logits, axis=-1, keepdims=True)
    p = jnp.exp(logits - m)                                               # [L, L]
    denom = jnp.sum(p, axis=-1, keepdims=True)                            # [L, 1]
    # dropout(p=0.0) == identity.

    ctx = jnp.dot(p.astype(jnp.bfloat16), vh.astype(jnp.bfloat16),
                  preferred_element_type=jnp.float32)                     # [L, d]
    ctx = ctx * pl.reciprocal(denom, approx=True)

    # Per-head slice of the output projection, accumulated across heads.
    acc_ref[...] += jnp.dot(ctx.astype(jnp.bfloat16), wo_ref[0],
                            preferred_element_type=jnp.float32)           # [L, H]

    @pl.when(h == nh - 1)
    def _():
        out_ref[0] = (acc_ref[...] + bo_ref[...]).astype(out_ref.dtype)


def xmu_multihead_attention(query, w_qkv, b_qkv, w_o, b_o, bias=None,
                            *, num_heads):
    """query: [B, L, H]; w_qkv: [3H, H]; b_qkv: [3H]; w_o: [H, H]; b_o: [H];
    bias (optional): broadcastable to [B, num_heads, L, L]."""
    B, L, H = query.shape
    nh = num_heads
    assert H % nh == 0
    d = H // nh
    scale = float(d) ** -0.5

    # PyTorch Linear computes x @ W^T + b.
    wqkv_t = jnp.asarray(w_qkv, jnp.float32).T                  # [H, 3H]
    bqkv = jnp.asarray(b_qkv, jnp.float32)                      # [3H]

    def head_major(w_cols, b_cols, fold_scale):
        # w_cols: [H, H] -> [nh, H, d]; b_cols: [H] -> [nh, 1, d]
        w = w_cols.reshape(H, nh, d).transpose(1, 0, 2)
        b = b_cols.reshape(nh, 1, d)
        if fold_scale:
            w = w * scale
            b = b * scale
        return w.astype(jnp.bfloat16), b

    wq_h, bq_h = head_major(wqkv_t[:, 0 * H:1 * H], bqkv[0 * H:1 * H], True)
    wk_h, bk_h = head_major(wqkv_t[:, 1 * H:2 * H], bqkv[1 * H:2 * H], False)
    wv_h, bv_h = head_major(wqkv_t[:, 2 * H:3 * H], bqkv[2 * H:3 * H], False)

    # Output projection: out = sum_h ctx_h @ (W_o^T)[h*d:(h+1)*d, :] + b_o
    wo_h = jnp.asarray(w_o, jnp.float32).T.reshape(nh, d, H).astype(jnp.bfloat16)
    bo_2d = jnp.asarray(b_o, jnp.float32).reshape(1, H)

    x_bf16 = query.astype(jnp.bfloat16)

    in_specs = [
        pl.BlockSpec((1, L, H), lambda b, h: (b, 0, 0)),        # x
        pl.BlockSpec((1, H, d), lambda b, h: (h, 0, 0)),        # W_q head slab
        pl.BlockSpec((1, 1, d), lambda b, h: (h, 0, 0)),        # b_q head slab
        pl.BlockSpec((1, H, d), lambda b, h: (h, 0, 0)),        # W_k
        pl.BlockSpec((1, 1, d), lambda b, h: (h, 0, 0)),        # b_k
        pl.BlockSpec((1, H, d), lambda b, h: (h, 0, 0)),        # W_v
        pl.BlockSpec((1, 1, d), lambda b, h: (h, 0, 0)),        # b_v
        pl.BlockSpec((1, d, H), lambda b, h: (h, 0, 0)),        # W_o head slab
        pl.BlockSpec((1, H), lambda b, h: (0, 0)),              # b_o
    ]
    args = [x_bf16, wq_h, bq_h, wk_h, bk_h, wv_h, bv_h, wo_h, bo_2d]

    have_bias = bias is not None
    if have_bias:
        bias = jnp.asarray(bias, jnp.float32)
        while bias.ndim < 4:
            bias = bias[None]
        # Keep leading (batch/head) broadcast dims un-materialized; only make
        # sure the last two dims are a full [L, L] tile.
        bias = jnp.broadcast_to(bias, bias.shape[:2] + (L, L))
        bb, bh = bias.shape[0], bias.shape[1]
        in_specs.append(
            pl.BlockSpec((1, 1, L, L),
                         lambda b, h: (b if bb > 1 else 0,
                                       h if bh > 1 else 0, 0, 0)))
        args.append(bias)

    kernel = functools.partial(_mha_head_kernel, have_bias=have_bias)

    return pl.pallas_call(
        kernel,
        out_shape=jax.ShapeDtypeStruct((B, L, H), query.dtype),
        grid_spec=pltpu.PrefetchScalarGridSpec(
            num_scalar_prefetch=0,
            grid=(B, nh),
            in_specs=in_specs,
            out_specs=pl.BlockSpec((1, L, H), lambda b, h: (b, 0, 0)),
            scratch_shapes=[pltpu.VMEM((L, H), jnp.float32)],
        ),
        compiler_params=pltpu.CompilerParams(
            dimension_semantics=("parallel", "arbitrary"),
            vmem_limit_bytes=48 * 1024 * 1024),
    )(*args)


def _reference(query, w_qkv, b_qkv, w_o, b_o, num_heads, bias=None):
    """Pure-JAX f32 reference mirroring the PyTorch forward."""
    B, L, H = query.shape
    d = H // num_heads
    qkv = query @ w_qkv.T + b_qkv
    q, k, v = jnp.split(qkv, 3, axis=-1)

    def split_heads(x):
        return x.reshape(B, L, num_heads, d).transpose(0, 2, 1, 3)

    qh = split_heads(q) * (d ** -0.5)
    kh = split_heads(k)
    vh = split_heads(v)
    logits = jnp.einsum("bhqd,bhkd->bhqk", qh, kh)
    if bias is not None:
        logits = logits + bias
    w = jax.nn.softmax(logits, axis=-1)
    x = jnp.einsum("bhqk,bhkd->bhqd", w, vh)
    x = x.transpose(0, 2, 1, 3).reshape(B, L, H)
    return x @ w_o.T + b_o


if __name__ == "__main__":
    B, L, H, NH = 2, 8, 32, 4

    key = jax.random.PRNGKey(0)
    k_x, k_wqkv, k_bqkv, k_wo, k_bo, k_bias = jax.random.split(key, 6)

    query = jax.random.normal(k_x, (B, L, H), dtype=jnp.float32)
    # Deterministic synthetic parameters (shapes per nn.Linear in __init__).
    w_qkv = jax.random.normal(k_wqkv, (3 * H, H), dtype=jnp.float32) * 0.05
    b_qkv = jax.random.normal(k_bqkv, (3 * H,), dtype=jnp.float32) * 0.05
    w_o = jax.random.normal(k_wo, (H, H), dtype=jnp.float32) * 0.05
    b_o = jax.random.normal(k_bo, (H,), dtype=jnp.float32) * 0.05

    # bias=None path (specialized kernel, no zero-bias materialization).
    out = xmu_multihead_attention(query, w_qkv, b_qkv, w_o, b_o,
                                  bias=None, num_heads=NH)
    out = jax.block_until_ready(out)
    ref = _reference(query, w_qkv, b_qkv, w_o, b_o, NH, bias=None)
    np.testing.assert_allclose(np.asarray(out), np.asarray(ref),
                               rtol=2e-2, atol=2e-2)

    # Broadcastable-bias path ([1, 1, L, L] stays un-expanded in HBM).
    attn_bias = jax.random.normal(k_bias, (1, 1, L, L), dtype=jnp.float32) * 0.5
    out_b = xmu_multihead_attention(query, w_qkv, b_qkv, w_o, b_o,
                                    bias=attn_bias, num_heads=NH)
    out_b = jax.block_until_ready(out_b)
    ref_b = _reference(query, w_qkv, b_qkv, w_o, b_o, NH, bias=attn_bias)
    np.testing.assert_allclose(np.asarray(out_b), np.asarray(ref_b),
                               rtol=2e-2, atol=2e-2)

    print("KERNEL_OK")
</pallas_src>

<mosaic_0001>
module attributes {stable_mosaic.version = 11 : i64} {
  func.func @_mha_head_kernel(%arg0: i32, %arg1: i32, %arg2: memref<1x8x32xbf16, #tpu.memory_space<vmem>>, %arg3: memref<1x32x8xbf16, #tpu.memory_space<vmem>>, %arg4: memref<1x1x8xf32, #tpu.memory_space<vmem>>, %arg5: memref<1x32x8xbf16, #tpu.memory_space<vmem>>, %arg6: memref<1x1x8xf32, #tpu.memory_space<vmem>>, %arg7: memref<1x32x8xbf16, #tpu.memory_space<vmem>>, %arg8: memref<1x1x8xf32, #tpu.memory_space<vmem>>, %arg9: memref<1x8x32xbf16, #tpu.memory_space<vmem>>, %arg10: memref<1x32xf32, #tpu.memory_space<vmem>>, %arg11: memref<1x8x32xf32, #tpu.memory_space<vmem>>, %arg12: memref<8x32xf32, #tpu.memory_space<vmem>>) attributes {dimension_semantics = [#tpu.dimension_semantics<parallel>, #tpu.dimension_semantics<arbitrary>], iteration_bounds = array<i64: 2, 4>, scalar_prefetch = 0 : i64, scratch_operands = 1 : i64, tpu.core_type = #tpu.core_type<tc>, window_params = [{transform_indices = @transform_0, window_bounds = array<i64: 1, 8, 32>}, {transform_indices = @transform_1, window_bounds = array<i64: 1, 32, 8>}, {transform_indices = @transform_2, window_bounds = array<i64: 1, 1, 8>}, {transform_indices = @transform_3, window_bounds = array<i64: 1, 32, 8>}, {transform_indices = @transform_4, window_bounds = array<i64: 1, 1, 8>}, {transform_indices = @transform_5, window_bounds = array<i64: 1, 32, 8>}, {transform_indices = @transform_6, window_bounds = array<i64: 1, 1, 8>}, {transform_indices = @transform_7, window_bounds = array<i64: 1, 8, 32>}, {pipeline_mode = #tpu.pipeline_mode<synchronous>, transform_indices = @transform_8, window_bounds = array<i64: 1, 32>}, {transform_indices = @transform_9, window_bounds = array<i64: 1, 8, 32>}]} {
    %c0_i32 = arith.constant 0 : i32
    %0 = arith.cmpi eq, %arg1, %c0_i32 : i32
    %1 = arith.extui %0 : i1 to i32
    %c0_i32_0 = arith.constant 0 : i32
    %2 = arith.cmpi ne, %1, %c0_i32_0 : i32
    scf.if %2 {
      %cst_36 = arith.constant 0.000000e+00 : f32
      %52 = vector.broadcast %cst_36 : f32 to vector<8x32xf32>
      %c0_37 = arith.constant 0 : index
      %c0_38 = arith.constant 0 : index
      %53 = vector.load %arg12[%c0_37, %c0_38] : memref<8x32xf32, #tpu.memory_space<vmem>>, vector<8x32xf32>
      tpu.vector_store %arg12[%c0_37, %c0_38], %52 {strides = array<i32>} : memref<8x32xf32, #tpu.memory_space<vmem>>, vector<8x32xf32>,
    } else {
    }
    %c0 = arith.constant 0 : index
    %c0_1 = arith.constant 0 : index
    %c0_2 = arith.constant 0 : index
    %3 = vector.load %arg2[%c0, %c0_1, %c0_2] : memref<1x8x32xbf16, #tpu.memory_space<vmem>>, vector<1x8x32xbf16>
    %4 = vector.shape_cast %3 : vector<1x8x32xbf16> to vector<8x32xbf16>
    %c0_3 = arith.constant 0 : index
    %c0_4 = arith.constant 0 : index
    %c0_5 = arith.constant 0 : index
    %5 = vector.load %arg3[%c0_3, %c0_4, %c0_5] : memref<1x32x8xbf16, #tpu.memory_space<vmem>>, vector<1x32x8xbf16>
    %6 = vector.shape_cast %5 : vector<1x32x8xbf16> to vector<32x8xbf16>
    %c0_6 = arith.constant 0 : index
    %c0_7 = arith.constant 0 : index
    %c0_8 = arith.constant 0 : index
    %7 = vector.load %arg5[%c0_6, %c0_7, %c0_8] : memref<1x32x8xbf16, #tpu.memory_space<vmem>>, vector<1x32x8xbf16>
    %8 = vector.shape_cast %7 : vector<1x32x8xbf16> to vector<32x8xbf16>
    %c0_9 = arith.constant 0 : index
    %c0_10 = arith.constant 0 : index
    %c0_11 = arith.constant 0 : index
    %9 = vector.load %arg7[%c0_9, %c0_10, %c0_11] : memref<1x32x8xbf16, #tpu.memory_space<vmem>>, vector<1x32x8xbf16>
    %10 = vector.shape_cast %9 : vector<1x32x8xbf16> to vector<32x8xbf16>
    %cst = arith.constant dense<0.000000e+00> : vector<8x8xf32>
    %11 = tpu.matmul %4, %6, %cst {dimension_numbers = #tpu.dot_dimension_numbers<[1], [0], [0], [1], [0, 0, 1, 1], [], []>} : vector<8x32xbf16>, vector<32x8xbf16>, vector<8x8xf32> -> vector<8x8xf32>
    %c0_12 = arith.constant 0 : index
    %c0_13 = arith.constant 0 : index
    %c0_14 = arith.constant 0 : index
    %12 = vector.load %arg4[%c0_12, %c0_13, %c0_14] : memref<1x1x8xf32, #tpu.memory_space<vmem>>, vector<1x1x8xf32>
    %13 = vector.shape_cast %12 : vector<1x1x8xf32> to vector<1x8xf32>
    %14 = vector.broadcast %13 : vector<1x8xf32> to vector<8x8xf32>
    %15 = arith.addf %11, %14 : vector<8x8xf32>
    %cst_15 = arith.constant dense<0.000000e+00> : vector<8x8xf32>
    %16 = tpu.matmul %4, %8, %cst_15 {dimension_numbers = #tpu.dot_dimension_numbers<[1], [0], [0], [1], [0, 0, 1, 1], [], []>} : vector<8x32xbf16>, vector<32x8xbf16>, vector<8x8xf32> -> vector<8x8xf32>
    %c0_16 = arith.constant 0 : index
    %c0_17 = arith.constant 0 : index
    %c0_18 = arith.constant 0 : index
    %17 = vector.load %arg6[%c0_16, %c0_17, %c0_18] : memref<1x1x8xf32, #tpu.memory_space<vmem>>, vector<1x1x8xf32>
    %18 = vector.shape_cast %17 : vector<1x1x8xf32> to vector<1x8xf32>
    %19 = vector.broadcast %18 : vector<1x8xf32> to vector<8x8xf32>
    %20 = arith.addf %16, %19 : vector<8x8xf32>
    %cst_19 = arith.constant dense<0.000000e+00> : vector<8x8xf32>
    %21 = tpu.matmul %4, %10, %cst_19 {dimension_numbers = #tpu.dot_dimension_numbers<[1], [0], [0], [1], [0, 0, 1, 1], [], []>} : vector<8x32xbf16>, vector<32x8xbf16>, vector<8x8xf32> -> vector<8x8xf32>
    %c0_20 = arith.constant 0 : index
    %c0_21 = arith.constant 0 : index
    %c0_22 = arith.constant 0 : index
    %22 = vector.load %arg8[%c0_20, %c0_21, %c0_22] : memref<1x1x8xf32, #tpu.memory_space<vmem>>, vector<1x1x8xf32>
    %23 = vector.shape_cast %22 : vector<1x1x8xf32> to vector<1x8xf32>
    %24 = vector.broadcast %23 : vector<1x8xf32> to vector<8x8xf32>
    %25 = arith.addf %21, %24 : vector<8x8xf32>
    %26 = arith.truncf %15 : vector<8x8xf32> to vector<8x8xbf16>
    %27 = arith.truncf %20 : vector<8x8xf32> to vector<8x8xbf16>
    %cst_23 = arith.constant dense<0.000000e+00> : vector<8x8xf32>
    %28 = tpu.matmul %26, %27, %cst_23 {dimension_numbers = #tpu.dot_dimension_numbers<[1], [1], [0], [0], [0, 0, 1, 0], [], []>} : vector<8x8xbf16>, vector<8x8xbf16>, vector<8x8xf32> -> vector<8x8xf32>
    %cst_24 = arith.constant dense<0xFF800000> : vector<8xf32>
    %29 = vector.multi_reduction <maximumf>, %28, %cst_24 [1] : vector<8x8xf32> to vector<8xf32>
    %30 = vector.shape_cast %29 : vector<8xf32> to vector<8x1xf32>
    %31 = vector.broadcast %30 : vector<8x1xf32> to vector<8x8xf32>
    %32 = arith.subf %28, %31 : vector<8x8xf32>
    %33 = math.exp %32 : vector<8x8xf32>
    %cst_25 = arith.constant dense<0.000000e+00> : vector<8xf32>
    %34 = vector.multi_reduction <add>, %33, %cst_25 [1] : vector<8x8xf32> to vector<8xf32>
    %35 = vector.shape_cast %34 : vector<8xf32> to vector<8x1xf32>
    %36 = arith.truncf %33 : vector<8x8xf32> to vector<8x8xbf16>
    %37 = arith.truncf %25 : vector<8x8xf32> to vector<8x8xbf16>
    %cst_26 = arith.constant dense<0.000000e+00> : vector<8x8xf32>
    %38 = tpu.matmul %36, %37, %cst_26 {dimension_numbers = #tpu.dot_dimension_numbers<[1], [0], [0], [1], [0, 0, 1, 1], [], []>} : vector<8x8xbf16>, vector<8x8xbf16>, vector<8x8xf32> -> vector<8x8xf32>
    %39 = tpu.reciprocal %35 {approx = true} : vector<8x1xf32> -> vector<8x1xf32>
    %40 = vector.broadcast %39 : vector<8x1xf32> to vector<8x8xf32>
    %41 = arith.mulf %38, %40 : vector<8x8xf32>
    %c0_27 = arith.constant 0 : index
    %c0_28 = arith.constant 0 : index
    %42 = vector.load %arg12[%c0_27, %c0_28] : memref<8x32xf32, #tpu.memory_space<vmem>>, vector<8x32xf32>
    %43 = arith.truncf %41 : vector<8x8xf32> to vector<8x8xbf16>
    %c0_29 = arith.constant 0 : index
    %c0_30 = arith.constant 0 : index
    %c0_31 = arith.constant 0 : index
    %44 = vector.load %arg9[%c0_29, %c0_30, %c0_31] : memref<1x8x32xbf16, #tpu.memory_space<vmem>>, vector<1x8x32xbf16>
    %45 = vector.shape_cast %44 : vector<1x8x32xbf16> to vector<8x32xbf16>
    %cst_32 = arith.constant dense<0.000000e+00> : vector<8x32xf32>
    %46 = tpu.matmul %43, %45, %cst_32 {dimension_numbers = #tpu.dot_dimension_numbers<[1], [0], [0], [1], [0, 0, 1, 1], [], []>} : vector<8x8xbf16>, vector<8x32xbf16>, vector<8x32xf32> -> vector<8x32xf32>
    %47 = arith.addf %42, %46 : vector<8x32xf32>
    %c0_33 = arith.constant 0 : index
    %c0_34 = arith.constant 0 : index
    %48 = vector.load %arg12[%c0_33, %c0_34] : memref<8x32xf32, #tpu.memory_space<vmem>>, vector<8x32xf32>
    tpu.vector_store %arg12[%c0_33, %c0_34], %47 {strides = array<i32>} : memref<8x32xf32, #tpu.memory_space<vmem>>, vector<8x32xf32>,
    %c3_i32 = arith.constant 3 : i32
    %49 = arith.cmpi eq, %arg1, %c3_i32 : i32
    %50 = arith.extui %49 : i1 to i32
    %c0_i32_35 = arith.constant 0 : i32
    %51 = arith.cmpi ne, %50, %c0_i32_35 : i32
    scf.if %51 {
      %c0_36 = arith.constant 0 : index
      %c0_37 = arith.constant 0 : index
      %52 = vector.load %arg12[%c0_36, %c0_37] : memref<8x32xf32, #tpu.memory_space<vmem>>, vector<8x32xf32>
      %c0_38 = arith.constant 0 : index
      %c0_39 = arith.constant 0 : index
      %53 = vector.load %arg10[%c0_38, %c0_39] : memref<1x32xf32, #tpu.memory_space<vmem>>, vector<1x32xf32>
      %54 = vector.broadcast %53 : vector<1x32xf32> to vector<8x32xf32>
      %55 = arith.addf %52, %54 : vector<8x32xf32>
      %c0_40 = arith.constant 0 : index
      %c0_41 = arith.constant 0 : index
      %c0_42 = arith.constant 0 : index
      %56 = vector.load %arg11[%c0_40, %c0_41, %c0_42] : memref<1x8x32xf32, #tpu.memory_space<vmem>>, vector<1x8x32xf32>
      %57 = vector.shape_cast %56 : vector<1x8x32xf32> to vector<8x32xf32>
      %58 = vector.shape_cast %55 : vector<8x32xf32> to vector<1x8x32xf32>
      tpu.vector_store %arg11[%c0_40, %c0_41, %c0_42], %58 {strides = array<i32>} : memref<1x8x32xf32, #tpu.memory_space<vmem>>, vector<1x8x32xf32>,
    } else {
    }
    return
  }
  func.func @transform_0(%arg0: i32, %arg1: i32) -> (i32, i32, i32) {
    %c0_i32 = arith.constant 0 : i32
    %c0_i32_0 = arith.constant 0 : i32
    %c0_i32_1 = arith.constant 0 : i32
    return %arg0, %c0_i32, %c0_i32_0 : i32, i32, i32
  }
  func.func @transform_1(%arg0: i32, %arg1: i32) -> (i32, i32, i32) {
    %c0_i32 = arith.constant 0 : i32
    %c0_i32_0 = arith.constant 0 : i32
    %c0_i32_1 = arith.constant 0 : i32
    return %arg1, %c0_i32, %c0_i32_0 : i32, i32, i32
  }
  func.func @transform_2(%arg0: i32, %arg1: i32) -> (i32, i32, i32) {
    %c0_i32 = arith.constant 0 : i32
    %c0_i32_0 = arith.constant 0 : i32
    %c0_i32_1 = arith.constant 0 : i32
    return %arg1, %c0_i32, %c0_i32_0 : i32, i32, i32
  }
  func.func @transform_3(%arg0: i32, %arg1: i32) -> (i32, i32, i32) {
    %c0_i32 = arith.constant 0 : i32
    %c0_i32_0 = arith.constant 0 : i32
    %c0_i32_1 = arith.constant 0 : i32
    return %arg1, %c0_i32, %c0_i32_0 : i32, i32, i32
  }
  func.func @transform_4(%arg0: i32, %arg1: i32) -> (i32, i32, i32) {
    %c0_i32 = arith.constant 0 : i32
    %c0_i32_0 = arith.constant 0 : i32
    %c0_i32_1 = arith.constant 0 : i32
    return %arg1, %c0_i32, %c0_i32_0 : i32, i32, i32
  }
  func.func @transform_5(%arg0: i32, %arg1: i32) -> (i32, i32, i32) {
    %c0_i32 = arith.constant 0 : i32
    %c0_i32_0 = arith.constant 0 : i32
    %c0_i32_1 = arith.constant 0 : i32
    return %arg1, %c0_i32, %c0_i32_0 : i32, i32, i32
  }
  func.func @transform_6(%arg0: i32, %arg1: i32) -> (i32, i32, i32) {
    %c0_i32 = arith.constant 0 : i32
    %c0_i32_0 = arith.constant 0 : i32
    %c0_i32_1 = arith.constant 0 : i32
    return %arg1, %c0_i32, %c0_i32_0 : i32, i32, i32
  }
  func.func @transform_7(%arg0: i32, %arg1: i32) -> (i32, i32, i32) {
    %c0_i32 = arith.constant 0 : i32
    %c0_i32_0 = arith.constant 0 : i32
    %c0_i32_1 = arith.constant 0 : i32
    return %arg1, %c0_i32, %c0_i32_0 : i32, i32, i32
  }
  func.func @transform_8(%arg0: i32, %arg1: i32) -> (i32, i32) {
    %c0_i32 = arith.constant 0 : i32
    %c0_i32_0 = arith.constant 0 : i32
    %c0_i32_1 = arith.constant 0 : i32
    return %c0_i32, %c0_i32_0 : i32, i32
  }
  func.func @transform_9(%arg0: i32, %arg1: i32) -> (i32, i32, i32) {
    %c0_i32 = arith.constant 0 : i32
    %c0_i32_0 = arith.constant 0 : i32
    %c0_i32_1 = arith.constant 0 : i32
    return %arg0, %c0_i32, %c0_i32_0 : i32, i32, i32
  }
}

</mosaic_0001>

<bundles_post_ra>
// kernel: tpu_custom_call.1
= control target key start
LH: loop header
LB: loop body
LE: loop exit
PB: predicated region body
PF: predicated region fallthrough
CT: control target
= control target key end

     0   :  { %s1294_s0 = inlined_call_operand.vmem [shape: bf16[2,8,32], index: 0, kind: input, shape index: {}]   ;;  %s1295_s1 = inlined_call_operand.vmem [shape: bf16[4,32,8], index: 1, kind: input, shape index: {}]   ;;  %s1296_s2 = inlined_call_operand.vmem [shape: f32[4,1,8], index: 2, kind: input, shape index: {}]   ;;  %s1297_s3 = inlined_call_operand.vmem [shape: bf16[4,32,8], index: 3, kind: input, shape index: {}]   ;;  %s1298_s4 = inlined_call_operand.vmem [shape: f32[4,1,8], index: 4, kind: input, shape index: {}]   ;;  %s1299_s5 = inlined_call_operand.vmem [shape: bf16[4,32,8], index: 5, kind: input, shape index: {}]   ;;  %s1300_s6 = inlined_call_operand.vmem [shape: f32[4,1,8], index: 6, kind: input, shape index: {}]   ;;  %s1301_s7 = inlined_call_operand.vmem [shape: bf16[4,8,32], index: 7, kind: input, shape index: {}]   ;;  %s1302_s8 = inlined_call_operand.vmem [shape: f32[1,32], index: 8, kind: input, shape index: {}]   ;;  %s1303_s9 = inlined_call_operand.hbm [shape: f32[2,8,32], index: 9, kind: output, shape index: {}]  }
   0x1   :  { %1317 = sst [smem:[#allocation17_spill]] %s1294_s0 }
   0x2   :  { %1318 = sst [smem:[#allocation18_spill]] %s1295_s1 }
   0x3   :  { %1319 = sst [smem:[#allocation19_spill]] %s1303_s9 }
   0x4   :  { %14 = vsyncpa [#allocation4], 0 }
   0x5   :  { %16 = vsyncpa [#allocation4 + $0x1], 0  ;;  %s1107_s30 = smov 0   ;;  %s1109_s10 = smov 0  }
   0x6   :  { %s1111_s11 = smov 0   ;;  %s1113_s12 = smov 0  }
   0x7   :  { %s1115_s13 = smov 0   ;;  %s1117_s14 = smov 0  }
   0x8   :  { %s1119_s15 = smov 0   ;;  %s1121_s16 = smov 0  }
   0x9 LB: > { %1320 = sst [smem:[#allocation6_spill]] %s1026_s30  ;;  %s821_s17 = sadd.s32 4294967295, %s1054_s16   ;;  %s1054_s16 = sphi %s1121_s16, %s22_s16   ;;  %s1050_s15 = sphi %s1119_s15, %s1349_s15   ;;  %s1046_s14 = sphi %s1117_s14, %s1348_s14   ;;  %s1042_s13 = sphi %s1115_s13, %s1347_s13   ;;  %s1038_s12 = sphi %s1113_s12, %s1346_s12   ;;  %s1034_s11 = sphi %s1111_s11, %s1345_s11   ;;  %s1030_s10 = sphi %s1109_s10, %s1344_s10   ;;  %s1026_s30 = sphi %s1107_s30, %s1343_s30  }
   0xa   : > { %1321 = sst [smem:[#allocation7_spill]] %s1030_s10  ;;  %s822_s18 = sadd.s32 4294967294, %s1054_s16  }
   0xb   : > { %1322 = sst [smem:[#allocation8_spill]] %s1034_s11  ;;  %s31_s19 = sadd.s32 1, %s1046_s14 }
   0xc   : > { %1323 = sst [smem:[#allocation9_spill]] %s1046_s14  ;;  %p32_p0 = scmp.ge.s32.totalorder %s31_s19, 4 }
   0xd   : > { %1324 = sst [smem:[#allocation10_spill]] %s1050_s15  ;;  %s34_s20 = sadd.s32 1, %s1050_s15 }
   0xe   : > { %1325 = sst [smem:[#allocation11_spill]] %s1054_s16  ;;  %p280_p1 = scmp.ne.s32.totalorder %s1034_s11, %s1030_s10 }
   0xf   : > { %p281_p2 = scmp.eq.s32.totalorder %s821_s17, 7  ;;  %s1351_s19 = smov (%p32_p0, %s31_s19), 0 }
  0x10   : > { %1326 = sst [smem:[#allocation12_spill]] %s1351_s19  ;;  %s1353_s20 = smov (!%p32_p0, %s34_s20), %s1050_s15 }
  0x11   : > { %p1156_p3 = por %p281_p2, %p280_p1  ;;  %p286_p4 = scmp.ne.s32.totalorder %s1030_s10, %s1026_s30 }
  0x12   : > { %p36_p5 = scmp.ge.s32.totalorder %s1353_s20, 2  ;;  %p287_p6 = scmp.eq.s32.totalorder %s822_s18, 7 }
  0x13   : > { %s1327_s21 = scalar_select %p1156_p3, 1, 0 }
  0x14   : > { %p825_p7 = scmp.ge.s32.totalorder %s1054_s16, 1  ;;  %p364_p8 = scmp.lt.s32.totalorder %s1054_s16, 9 }
  0x15   : > { %1328 = sst [smem:[#allocation13_spill]] %s1327_s21  ;;  %s1355_s20 = smov (%p36_p5, %s1353_s20), 0 }
  0x16   : > { %1329 = sst [smem:[#allocation14_spill]] %s1355_s20  ;;  %p1166_p9 = por %p287_p6, %p286_p4 }
  0x17   : > { %p365_p10 = pnand %p825_p7, %p364_p8  ;;  %s267_s23 = ssub.s32 %s1050_s15, %s1355_s20 }
  0x18   : > { %s1330_s22 = scalar_select %p1166_p9, 1, 0 }
  0x19   : > { %s270_s24 = sadd.s32 1, %s1034_s11  ;;  %p268_p11 = scmp.eq.s32.totalorder %s267_s23, 0 }
  0x1a   : > { %1331 = sst [smem:[#allocation15_spill]] %s1330_s22  ;;  %368 = sbr.rel (%p365_p10) target bundleno = 747 (0x2eb), region = 56 }
  0x1b   : > { %s1174_s25 = scalar_select %p268_p11, %s1034_s11, %s270_s24  }
  0x1c   : > { %s1306_s26 = sand.u32 (!%p365_p10), 1, %s1030_s10   ;;  %p427_p12 = scmp.lt.s32.totalorder (!%p365_p10), %s1042_s13, 1 }
  0x1d   : > { %1332 = sst [smem:[#allocation16_spill]] %s1174_s25  ;;  %s1180_s27 = sshll.u32 (!%p365_p10), %s1306_s26, 3 }
  0x1e   : > { %p431_p13 = scmp.lt.s32.totalorder (!%p365_p10), %s1038_s12, 3  ;;  %s1333_s0 = sld [smem:[#allocation17_spill]] (!%p365_p10) }
  0x1f   : > { %s428_s28 = scalar_select %p427_p12, %s1042_s13, 1 }
  0x20   : > { %s1185_s29 = scalar_select %p431_p13, %s1038_s12, 3 }
  0x21   : > { %s827_s17 = sshll.u32 %s428_s28, 2  ;;  %s1334_s1 = sld [smem:[#allocation18_spill]] }
  0x22   : > { %s871_s20 = sshll.u32 %s1185_s29, 4  ;;  %s438_s11 = scalar_lea.vmem %s1296_s2, %s1185_s29 }
  0x23   : > { %s443_s16 = scalar_lea.vmem %s1297_s3, %s871_s20  ;;  %s446_s28 = scalar_lea.vmem %s1298_s4, %s1185_s29 }
  0x24   : > { %s430_s24 = scalar_lea.vmem %s1333_s0, %s827_s17  ;;  %s451_s17 = scalar_lea.vmem %s1299_s5, %s871_s20 }
  0x25   : > { %s454_s15 = scalar_lea.vmem %s1300_s6, %s1185_s29  ;;  %s834_s19 = sshll.u32 %s1185_s29, 2 }
  0x26   : > { %s1216_s25 = scalar_lea.vmem %s1301_s7, %s834_s19  ;;  %s426_s30 = scalar_lea.vmem [#allocation3], %s1180_s27 }
  0x27   : > { %s435_s26 = scalar_lea.vmem %s1334_s1, %s871_s20  ;;  %p835_p0 = scmp.ne.s32.totalorder %s1038_s12, 0 }
  0x29   : > { %463 = sbr.rel (%p835_p0) target bundleno = 48 (0x30), region = 60 }
  0x2e   : > { %vm464_vm0 = vcmask 261120   ;;  %v1056_v0 = vmov 0.0  }
  0x2f   : > { %465 = vst.msk [vmem:[#allocation2] sm:$0xff] %vm464_vm0, %v1056_v0 }
  0x30 PF: > { %v875_v1 = vld [vmem:[%s435_s26 + $0x8] sm:$0xff]  ;;  %v874_v3 = vld [vmem:[%s435_s26] sm:$0xff]  ;;  %vm495_vm1 = vcmask 261120   ;;  %vm572_vm2 = vcmask 64512   ;;  %vm606_vm3 = vcmask 1043456   ;;  %p866_p1 = scmp.ne.s32.totalorder %s1038_s12, 3 }
  0x31   : > { %v877_v2 = vld [vmem:[%s443_s16 + $0x8] sm:$0xff]  ;;  %505 = vmatpush.bf16.msra.mxu0 %v875_v1  ;;  %v876_v4 = vld [vmem:[%s443_s16] sm:$0xff] }
  0x32   : > { %534 = vmatpush.bf16.msra.mxu1 %v877_v2  ;;  %v466_v5 = vld [vmem:[%s430_s24] sm:$0xf]  ;;  %v879_v6 = vld [vmem:[%s451_s17 + $0x8] sm:$0xff] }
  0x33   : > { %563 = vmatpush.bf16.msra.mxu2 %v879_v6  ;;  %v878_v7 = vld [vmem:[%s451_s17] sm:$0xff] }
  0x34   : > { %v953_v8 = vld [vmem:[%s446_s28] ss:$0 sm:$0xff] }
  0x35   : > { %506 = vmatpush.bf16.msra.mxu0 %v874_v3  ;;  %v952_v11 = vld [vmem:[%s438_s11] ss:$0 sm:$0xff] }
  0x36   : > { %535 = vmatpush.bf16.msra.mxu1 %v876_v4  ;;  %v954_v19 = vld [vmem:[%s454_s15] ss:$0 sm:$0xff] }
  0x37   : > { %564 = vmatpush.bf16.msra.mxu2 %v878_v7  ;;  %v627_v28 = vld [vmem:[%s1216_s25] sm:$0xf] }
  0x38   : > { %844 = vmatmul.msk.bf16.vlgmr.msra.gmra.mxu0 %vm495_vm1, %v466_v5  ;;  %v632_v29 = vsel %vm606_vm3, %v627_v28, 0  ;;  %v625_v42 = vld [vmem:[#allocation2] sm:$0xff] }
  0x39   : > { %853 = vmatmul.msk.bf16.vlgmr.msra.gmra.mxu1 %vm495_vm1, %v466_v5 }
  0x3a   : > { %862 = vmatmul.msk.bf16.vlgmr.msra.gmra.mxu2 %vm495_vm1, %v466_v5  ;;  %641 = vmatpush.bf16.msrb.mxu1 %v632_v29 }
  0xb5   : > { %v508_v9 = vpop.f32.mrf.mxu0 }
  0xb6   : > { %v537_v10 = vpop.f32.mrf.mxu1  ;;  %v509_v14 = vadd.f32 %v952_v11, %v508_v9 }
  0xb7   : > { %v538_v12 = vadd.f32 %v953_v8, %v537_v10 }
  0xb8   : > { %v570_v18 = vpack.c.bf16 %v509_v14, %v509_v14 }
  0xb9   : > { %v571_v13 = vpack.c.bf16 %v538_v12, %v538_v12 }
  0xbb   : > { %v577_v15 = vsel %vm572_vm2, %v571_v13, 0 }
  0xbc   : > { %586 = vmatpush.bf16.xpose.msra.mxu3 %v577_v15 }
  0xbd   : > { %v510_v16 = vpop.f32.mrf.mxu0  ;;  %v566_v20 = vpop.f32.mrf.mxu2 }
  0xbe   : > { %v539_v17 = vpop.f32.mrf.mxu1  ;;  %v567_v21 = vadd.f32 %v954_v19, %v566_v20 }
  0xc0   : > { %v602_v22 = vpack.c.bf16 %v567_v21, %v567_v21 }
  0xc2   : > { %v608_v23 = vsel %vm606_vm3, %v602_v22, 0 }
  0xc3   : > { %863 = vmatmul.msk.bf16.vlgmr.msra.gmra.mxu3 %vm572_vm2, %v570_v18  ;;  %617 = vmatpush.bf16.msrb.mxu0 %v608_v23 }
  0xc5   : > { %v568_v24 = vpop.f32.mrf.mxu2 }
 0x146   : > { %v588_v25 = vpop.f32.mrf.mxu3 }
 0x147   : > { %v592_v26 = vsel %vm572_vm2, %v588_v25, -inf }
 0x148   : > { %593 = vmax.xlane.f32.xlu0 %v592_v26 }
 0x14e   : > { %v590_v27 = vpop.f32.mrf.mxu3 }
 0x1bb   : > { %v594_v30 = vpop.xlane.xlu0 %593 }
 0x1bc   : > { %v595_v31 = vsub.f32 %v588_v25, %v594_v30 }
 0x1be   : > { %v596_v32 = vmul.f32 1.442695, %v595_v31 }
 0x1c0   : > { %955 = vpow2.f32 %v596_v32 }
 0x1c6   : > { %v956_v33 = vpop.eup %955 }
 0x1c7   : > { %v598_v34 = vsel %vm572_vm2, %v956_v33, 0.0  ;;  %v601_v35 = vpack.c.bf16 %v956_v33, %v956_v33 }
 0x1c8   : > { %599 = vadd.xlane.f32.xlu0 %v598_v34 }
 0x1c9   : > { %864 = vmatmul.msk.bf16.vlgmr.msrb.gmra.mxu0 %vm572_vm2, %v601_v35 }
 0x23b   : > { %v600_v36 = vpop.xlane.xlu0 %599 }
 0x23c   : > { %957 = vrcp.f32 %v600_v36 }
 0x242   : > { %v958_v37 = vpop.eup %957 }
 0x246   : > { %v619_v38 = vpop.f32.mrf.mxu0 }
 0x247   : > { %v624_v39 = vmul.f32 %v958_v37, %v619_v38 }
 0x249   : > { %v626_v40 = vpack.c.bf16 %v624_v39, %v624_v39 }
 0x24b   : > { %865 = vmatmul.msk.bf16.vlgmr.msrb.gmra.mxu1 %vm572_vm2, %v626_v40 }
 0x24e   : > { %v621_v41 = vpop.f32.mrf.mxu0 }
 0x2c8   : > { %v643_v43 = vpop.f32.mrf.mxu1 }
 0x2c9   : > { %v647_v44 = vadd.f32 %v643_v43, %v625_v42 }
 0x2cb   : > { %648 = vst.msk [vmem:[#allocation2] sm:$0xff] %vm495_vm1, %v647_v44 }
 0x2cc   : > { %652 = sbr.rel (%p866_p1) target bundleno = 726 (0x2d6), region = 64 }
 0x2d0   : > { %v645_v45 = vpop.f32.mrf.mxu1 }
 0x2d1   : > { %v959_v47 = vld [vmem:[%s1302_s8] ss:$0 sm:$0xff] }
 0x2d2   : > { %v653_v46 = vld [vmem:[#allocation2] sm:$0xff] }
 0x2d3   : > { %v658_v48 = vadd.f32 %v959_v47, %v653_v46 }
 0x2d5   : > { %659 = vst.msk [vmem:[%s426_s30] sm:$0xff] %vm495_vm1, %v658_v48 }
 0x2d6 PF: > { %s1335_s20 = sld [smem:[#allocation7_spill]]  ;;  %s868_s22 = sshll.u32 %s1042_s13, 3 }
 0x2d7   : > { %s1337_s12 = sld [smem:[#allocation19_spill]]  ;;  %s673_s18 = sshll.u32 %s426_s30, 4  ;;  %s674_s18 = int_to_ptr.vmem [resolvable:$true] %s673_s18 }
 0x2dc   : > { %s1339_s23 = sand.u32 1, %s1335_s20  }
 0x2dd   : > { %s1338_s24 = smov %s1337_s12  ;;  %s671_s28 = scalar_lea.hbm %s1337_s12, %s868_s22 }
 0x2de   : > { %s675_s17 = sshll.u32 %s671_s28, 4  ;;  %s661_s15 = scalar_lea.sflag [#allocation4], %s1339_s23  ;;  %s676_s17 = int_to_ptr.hbm [resolvable:$true] %s675_s17 }
 0x2df   : > { %s974_s19 = sshra.s32 %s676_s17, 4  ;;  %s980_s0 = scalar_lea.hbm %s1338_s24, 16  ;;  %s975_s19 = int_to_ptr.hbm [resolvable:$true] %s974_s19 }
 0x2e0   : > { %s976_s14 = scalar_lea.hbm %s975_s19, 8  ;;  %p981_p6 = scmp.lt.s32.totalorder %s975_s19, %s1338_s24 }
 0x2e1   : > { %p977_p2 = scmp.ne.s32.totalorder %s975_s19, %s976_s14  ;;  %p982_p7 = scmp.lt.s32.totalorder %s980_s0, %s976_s14 }
 0x2e3   : > { %p978_p4 = pnand %p977_p2, %p1156_p3  ;;  %p983_p8 = por %p982_p7, %p981_p6 }
 0x2e5   : > { %p979_p5 = pneg %p978_p4 }
 0x2e7   : > { %p984_p10 = pnand %p983_p8, %p979_p5 }
 0x2e9   : > { %987 = shalt.err (!%p984_p10)
}
 0x2ea   : > { %880 = dma.vmem_to_hbm [thread:$0]  (%p1156_p3), %s674_s18, 128, %s676_s17, %s661_s15  }
 0x2eb PF: > { %s1340_s27 = sld [smem:[#allocation11_spill]] }
 0x2ec   : > { %s1341_s30 = sld [smem:[#allocation6_spill]] }
 0x2f1   : > { %p886_p11 = scmp.ge.s32.totalorder %s1340_s27, 2 }
 0x2f2   : > { %s687_s11 = sand.u32 1, %s1341_s30  }
 0x2f3   : > { %p883_p12 = pnand %p886_p11, %p1166_p9  ;;  %s688_s16 = scalar_lea.sflag [#allocation4], %s687_s11 }
 0x2f5   : > { %p884_p13 = pneg %p883_p12 }
 0x2f7   : > { %1021 = dma.done.wait (%p884_p13), %s688_s16, 128  }
 0x2f8   : > { %1023 = vsyncadd (%p884_p13), %s688_s16, 4294967168  ;;  %s22_s16 = sadd.s32 1, %s1340_s27   ;;  %s1343_s30 = sld [smem:[#allocation7_spill]] }
 0x2f9   : > { %p19_p0 = scmp.ge.s32.totalorder %s22_s16, 10   ;;  %s1344_s10 = sld [smem:[#allocation8_spill]] }
 0x2fa   : > { %s1345_s11 = sld [smem:[#allocation16_spill]] }
 0x2fb   : > { %s1346_s12 = sld [smem:[#allocation9_spill]]  ;;  %21 = sbr.rel (!%p19_p0) target bundleno = 9 (0x9), region = 120 }
 0x2fc   : > { %s1347_s13 = sld [smem:[#allocation10_spill]] }
 0x2fd   : > { %s1348_s14 = sld [smem:[#allocation12_spill]] }
 0x2fe   : > { %s1349_s15 = sld [smem:[#allocation14_spill]] }
 0x300   :  { %694 = vsyncpa [#allocation4], 1 }
 0x301   :  { %696 = vsyncpa [#allocation4 + $0x1], 1 }

</bundles_post_ra>
